<compile_context>
chip_gen: v6e
topology: v6e:2x2x1
jax: 0.10.0
libtpu: 0.0.40
codegen_flags: <defaults>
</compile_context>

<pallas_src>
import functools

import jax
import jax.numpy as jnp
from jax.experimental import pallas as pl
from jax.experimental.pallas import tpu as pltpu


# ---------------------------------------------------------------------------
# 1) Elementwise alpha blend:  (1 - alpha) * frames + alpha * mask
# ---------------------------------------------------------------------------
def _blend_kernel(f_ref, m_ref, o_ref, *, alpha):
    o_ref[...] = (1.0 - alpha) * f_ref[...] + alpha * m_ref[...]


def alpha_blend(frames, mask, alpha, *, block_rows=256):
    """Pallas elementwise blend; frames and mask must have the same shape."""
    assert frames.shape == mask.shape and frames.dtype == mask.dtype
    shape = frames.shape
    cols = shape[-1] * shape[-2]          # lane-dense last dim (H*W)
    rows = frames.size // cols
    f2 = frames.reshape(rows, cols)
    m2 = mask.reshape(rows, cols)

    tr = min(block_rows, rows)
    rows_p = ((rows + tr - 1) // tr) * tr
    if rows_p != rows:
        f2 = jnp.pad(f2, ((0, rows_p - rows), (0, 0)))
        m2 = jnp.pad(m2, ((0, rows_p - rows), (0, 0)))

    out = pl.pallas_call(
        functools.partial(_blend_kernel, alpha=float(alpha)),
        out_shape=jax.ShapeDtypeStruct((rows_p, cols), frames.dtype),
        grid=(rows_p // tr,),
        in_specs=[
            pl.BlockSpec((tr, cols), lambda i: (i, 0)),
            pl.BlockSpec((tr, cols), lambda i: (i, 0)),
        ],
        out_specs=pl.BlockSpec((tr, cols), lambda i: (i, 0)),
        compiler_params=pltpu.CompilerParams(dimension_semantics=("parallel",)),
    )(f2, m2)
    if rows_p != rows:
        out = out[:rows]
    return out.reshape(shape)


# ---------------------------------------------------------------------------
# 2) Global average pool:  (B, S, C) -> (B, C), mean over S
#    (== AdaptiveAvgPool3d(1) + Flatten with S = T*H*W, channel-last layout)
# ---------------------------------------------------------------------------
def _global_avg_pool_kernel(x_ref, o_ref, acc_ref, *, inv_s):
    s = pl.program_id(2)

    @pl.when(s == 0)
    def _():
        acc_ref[...] = jnp.zeros_like(acc_ref)

    # Accumulate in float32 regardless of input dtype (reduced axis = sublanes).
    acc_ref[...] += jnp.sum(x_ref[...].astype(jnp.float32), axis=1)

    @pl.when(s == pl.num_programs(2) - 1)
    def _():
        o_ref[...] = (acc_ref[...] * inv_s).astype(o_ref.dtype)


def global_avg_pool(x, *, tb=8, ts=512, tc=256, vmem_limit_bytes=None):
    """x: (B, S, C) -> (B, C) via Pallas, mean over the S axis."""
    B, S, C = x.shape

    # Batch tiling: >= 8 sublane rows per output tile when B allows; no pad for tiny B.
    if B % tb == 0:
        tb_eff, Bp = tb, B
    elif B < tb:
        tb_eff, Bp = B, B
    else:
        tb_eff = tb
        Bp = ((B + tb - 1) // tb) * tb

    # Reduction tiling over S: bounds per-step VMEM; zero padding is sum-neutral.
    if S <= ts:
        ts_eff, Sp = S, S
    else:
        ts_eff = ts
        Sp = ((S + ts - 1) // ts) * ts

    # Channel tiling: lane-dense (multiple of 128) blocks, second parallel grid axis.
    if C % tc == 0 and tc % 128 == 0:
        tc_eff = tc
    else:
        tc_eff = C

    xp = x
    if Bp != B or Sp != S:
        xp = jnp.pad(x, ((0, Bp - B), (0, Sp - S), (0, 0)))

    grid = (Bp // tb_eff, C // tc_eff, Sp // ts_eff)
    inv_s = 1.0 / float(S)  # divide by the true number of pooled positions

    cost = pl.CostEstimate(
        flops=B * S * C,
        transcendentals=0,
        bytes_accessed=x.size * x.dtype.itemsize + B * C * x.dtype.itemsize,
    )

    out = pl.pallas_call(
        functools.partial(_global_avg_pool_kernel, inv_s=inv_s),
        out_shape=jax.ShapeDtypeStruct((Bp, C), x.dtype),
        grid=grid,
        in_specs=[pl.BlockSpec((tb_eff, ts_eff, tc_eff), lambda b, c, s: (b, s, c))],
        out_specs=pl.BlockSpec((tb_eff, tc_eff), lambda b, c, s: (b, c)),
        scratch_shapes=[pltpu.VMEM((tb_eff, tc_eff), jnp.float32)],
        compiler_params=pltpu.CompilerParams(
            dimension_semantics=("parallel", "parallel", "arbitrary"),
            vmem_limit_bytes=vmem_limit_bytes,
        ),
        cost_estimate=cost,
    )(xp)
    if Bp != B:
        out = out[:B]
    return out


# ---------------------------------------------------------------------------
# 3) Linear (+ optional ReLU) for the small classifier head
# ---------------------------------------------------------------------------
def _linear_kernel(x_ref, w_ref, b_ref, o_ref, *, apply_relu):
    y = jnp.dot(x_ref[...], w_ref[...], preferred_element_type=jnp.float32)
    y = y + b_ref[...].astype(jnp.float32)
    if apply_relu:
        y = jnp.maximum(y, 0.0)
    o_ref[...] = y.astype(o_ref.dtype)


def linear(x, w, b, *, apply_relu=False):
    B, K = x.shape
    K2, N = w.shape
    assert K == K2 and b.shape == (N,)
    return pl.pallas_call(
        functools.partial(_linear_kernel, apply_relu=apply_relu),
        out_shape=jax.ShapeDtypeStruct((B, N), x.dtype),
        grid=(1,),
        in_specs=[
            pl.BlockSpec((B, K), lambda i: (0, 0)),
            pl.BlockSpec((K, N), lambda i: (0, 0)),
            pl.BlockSpec((1, N), lambda i: (0, 0)),
        ],
        out_specs=pl.BlockSpec((B, N), lambda i: (0, 0)),
    )(x, w, b.reshape(1, N))


if __name__ == "__main__":
    key = jax.random.PRNGKey(0)
    k_frames, k_mask, k_feat, k_w1, k_b1, k_w2, k_b2 = jax.random.split(key, 7)

    B, C_in, T, Hs, Ws = 2, 3, 4, 16, 16
    class_num = 8
    alpha = 0.4

    frames = jax.random.normal(k_frames, (B, C_in, T, Hs, Ws), dtype=jnp.float32)
    mask = jax.random.normal(k_mask, (B, 1, T, Hs, Ws), dtype=jnp.float32)

    # Stage 1 (per-extractor-stage blend in the PyTorch forward):
    # mask spatial dims already match the frames here, so no interpolate is needed.
    mask_b = jnp.broadcast_to(mask, frames.shape)
    masked = alpha_blend(frames, mask_b, alpha)

    # TODO(synk): r3d_18 stem + layer1..4 not implemented; use a random channel-last
    # feature map standing in for the backbone output (B, t, h, w, 512).
    t, h, w, C_feat = 2, 4, 4, 512
    feats = jax.random.normal(k_feat, (B, t, h, w, C_feat), dtype=jnp.float32)

    # Stage 2: AdaptiveAvgPool3d(1) + Flatten == mean over (t, h, w) per channel.
    pooled = global_avg_pool(feats.reshape(B, t * h * w, C_feat))

    # Stage 3: classifier head (Dropout(0.4) is identity in eval mode).
    w1 = jax.random.normal(k_w1, (512, 128), jnp.float32) / jnp.sqrt(512.0)
    b1 = jax.random.normal(k_b1, (128,), jnp.float32) * 0.01
    w2 = jax.random.normal(k_w2, (128, class_num), jnp.float32) / jnp.sqrt(128.0)
    b2 = jax.random.normal(k_b2, (class_num,), jnp.float32) * 0.01

    hidden = linear(pooled, w1, b1, apply_relu=True)
    logits = linear(hidden, w2, b2, apply_relu=False)
    logits = jax.block_until_ready(logits)

    # Plain-JAX references.
    ref_masked = (1.0 - alpha) * frames + alpha * mask_b
    ref_pooled = jnp.mean(feats.reshape(B, -1, C_feat), axis=1)
    ref_hidden = jnp.maximum(
        jnp.dot(ref_pooled, w1, precision=jax.lax.Precision.HIGHEST) + b1, 0.0
    )
    ref_logits = jnp.dot(ref_hidden, w2, precision=jax.lax.Precision.HIGHEST) + b2

    assert masked.shape == frames.shape
    assert jnp.allclose(masked, ref_masked, atol=1e-6, rtol=1e-6)
    assert pooled.shape == (B, C_feat)
    assert jnp.allclose(pooled, ref_pooled, atol=1e-5, rtol=1e-5)
    assert logits.shape == (B, class_num)
    assert jnp.allclose(logits, ref_logits, atol=1e-2, rtol=1e-2)

    print("KERNEL_OK")
</pallas_src>

<mosaic_0001>
module attributes {stable_mosaic.version = 11 : i64} {
  func.func @_blend_kernel(%arg0: i32, %arg1: memref<24x256xf32, #tpu.memory_space<vmem>>, %arg2: memref<24x256xf32, #tpu.memory_space<vmem>>, %arg3: memref<24x256xf32, #tpu.memory_space<vmem>>) attributes {dimension_semantics = [#tpu.dimension_semantics<parallel>], iteration_bounds = array<i64: 1>, scalar_prefetch = 0 : i64, scratch_operands = 0 : i64, tpu.core_type = #tpu.core_type<tc>, window_params = [{transform_indices = @transform_0, window_bounds = array<i64: 24, 256>}, {transform_indices = @transform_1, window_bounds = array<i64: 24, 256>}, {transform_indices = @transform_2, window_bounds = array<i64: 24, 256>}]} {
    %c0 = arith.constant 0 : index
    %c0_0 = arith.constant 0 : index
    %0 = vector.load %arg1[%c0, %c0_0] : memref<24x256xf32, #tpu.memory_space<vmem>>, vector<24x256xf32>
    %cst = arith.constant 6.000000e-01 : f32
    %1 = vector.broadcast %cst : f32 to vector<24x256xf32>
    %2 = arith.mulf %1, %0 : vector<24x256xf32>
    %c0_1 = arith.constant 0 : index
    %c0_2 = arith.constant 0 : index
    %3 = vector.load %arg2[%c0_1, %c0_2] : memref<24x256xf32, #tpu.memory_space<vmem>>, vector<24x256xf32>
    %cst_3 = arith.constant 4.000000e-01 : f32
    %4 = vector.broadcast %cst_3 : f32 to vector<24x256xf32>
    %5 = arith.mulf %4, %3 : vector<24x256xf32>
    %6 = arith.addf %2, %5 : vector<24x256xf32>
    %c0_4 = arith.constant 0 : index
    %c0_5 = arith.constant 0 : index
    %7 = vector.load %arg3[%c0_4, %c0_5] : memref<24x256xf32, #tpu.memory_space<vmem>>, vector<24x256xf32>
    tpu.vector_store %arg3[%c0_4, %c0_5], %6 {strides = array<i32>} : memref<24x256xf32, #tpu.memory_space<vmem>>, vector<24x256xf32>,
    return
  }
  func.func @transform_0(%arg0: i32) -> (i32, i32) {
    %c0_i32 = arith.constant 0 : i32
    %c0_i32_0 = arith.constant 0 : i32
    return %arg0, %c0_i32 : i32, i32
  }
  func.func @transform_1(%arg0: i32) -> (i32, i32) {
    %c0_i32 = arith.constant 0 : i32
    %c0_i32_0 = arith.constant 0 : i32
    return %arg0, %c0_i32 : i32, i32
  }
  func.func @transform_2(%arg0: i32) -> (i32, i32) {
    %c0_i32 = arith.constant 0 : i32
    %c0_i32_0 = arith.constant 0 : i32
    return %arg0, %c0_i32 : i32, i32
  }
}

</mosaic_0001>

<bundles_post_ra>
// kernel: tpu_custom_call.1
= control target key start
LH: loop header
LB: loop body
LE: loop exit
PB: predicated region body
PF: predicated region fallthrough
CT: control target
= control target key end

     0   :  { %7 = vsyncpa [#allocation3], 0  ;;  %s203_s0 = inlined_call_operand.hbm [shape: f32[24,256], index: 0, kind: input, shape index: {}]   ;;  %s204_s1 = inlined_call_operand.hbm [shape: f32[24,256], index: 1, kind: input, shape index: {}]   ;;  %s205_s2 = inlined_call_operand.hbm [shape: f32[24,256], index: 2, kind: output, shape index: {}]  }
   0x1   :  { %8 = vsyncpa [#allocation6], 0 }
   0x2   :  { %9 = vsyncpa [#allocation4], 0  ;;  %s165_s9 = smov [#allocation2]  }
   0x3   :  { %s15_s10 = sshll.u32 %s165_s9, 4  ;;  %s16_s10 = int_to_ptr.vmem [resolvable:$true] %s15_s10 }
   0x4   :  { %s107_s11 = scalar_lea.vmem %s16_s10, 768  ;;  %p112_p1 = scmp.lt.s32.totalorder %s16_s10, %s16_s10 }
   0x5   :  { %p108_p0 = scmp.ne.s32.totalorder %s16_s10, %s107_s11  ;;  %p113_p2 = scmp.lt.s32.totalorder %s107_s11, %s107_s11 }
   0x7   :  { %p114_p3 = por %p113_p2, %p112_p1 }
   0x9   :  { %p115_p4 = pnand %p114_p3, %p108_p0 }
   0xb   :  { %118 = shalt.err (!%p115_p4)
}
   0xc   :  { %s166_s12 = smov 256   ;;  %s167_s13 = smov 16  }
   0xd   :  { %21 = dma.hbm_to_vmem [thread:$0]  %s203_s0, 768, %s16_s10, [#allocation3], %s166_s12, %s166_s12, %s167_s13  }
   0xe   :  { %s168_s16 = smov [#allocation5]  }
   0xf   :  { %s27_s17 = sshll.u32 %s168_s16, 4  ;;  %s28_s17 = int_to_ptr.vmem [resolvable:$true] %s27_s17 }
  0x10   :  { %s127_s18 = scalar_lea.vmem %s28_s17, 768  ;;  %p132_p6 = scmp.lt.s32.totalorder %s28_s17, %s28_s17 }
  0x11   :  { %p128_p5 = scmp.ne.s32.totalorder %s28_s17, %s127_s18  ;;  %p133_p7 = scmp.lt.s32.totalorder %s127_s18, %s127_s18 }
  0x13   :  { %p134_p8 = por %p133_p7, %p132_p6 }
  0x15   :  { %p135_p9 = pnand %p134_p8, %p128_p5 }
  0x17   :  { %138 = shalt.err (!%p135_p9)
}
  0x18   :  { %33 = dma.hbm_to_vmem [thread:$0]  %s204_s1, 768, %s28_s17, [#allocation6], %s166_s12, %s166_s12, %s167_s13  }
  0x19   :  { %159 = dma.done.wait [#allocation3], 768  }
  0x1a   :  { %160 = vsyncadd [#allocation3], 4294966528 }
  0x1b   :  { %161 = dma.done.wait [#allocation6], 768  }
  0x1c   :  { %162 = vsyncadd [#allocation6], 4294966528  ;;  %v40_v0 = vld [vmem:[#allocation2] sm:$0xff]  ;;  %v52_v1 = vld [vmem:[#allocation5] sm:$0xff]  ;;  %s169_s0 = smov [#allocation7]  }
  0x1d   :  { %v41_v2 = vld [vmem:[#allocation2 + $0x8] sm:$0xff]  ;;  %v46_v3 = vmul.f32 0.6, %v40_v0  ;;  %v58_v4 = vmul.f32 0.4, %v52_v1  ;;  %v53_v6 = vld [vmem:[#allocation5 + $0x8] sm:$0xff] }
  0x1e   :  { %v47_v5 = vmul.f32 0.6, %v41_v2  ;;  %v42_v7 = vld [vmem:[#allocation2 + $0x10] sm:$0xff]  ;;  %v54_v8 = vld [vmem:[#allocation5 + $0x10] sm:$0xff]  ;;  %v59_v10 = vmul.f32 0.4, %v53_v6 }
  0x1f   :  { %v64_v9 = vadd.f32 %v58_v4, %v46_v3  ;;  %v48_v11 = vmul.f32 0.6, %v42_v7  ;;  %v60_v12 = vmul.f32 0.4, %v54_v8  ;;  %v43_v13 = vld [vmem:[#allocation2 + $0x18] sm:$0xff]  ;;  %v55_v14 = vld [vmem:[#allocation5 + $0x18] sm:$0xff] }
  0x20   :  { %v44_v15 = vld [vmem:[#allocation2 + $0x20] sm:$0xff]  ;;  %v65_v16 = vadd.f32 %v59_v10, %v47_v5  ;;  %v49_v18 = vmul.f32 0.6, %v43_v13  ;;  %v61_v19 = vmul.f32 0.4, %v55_v14  ;;  %v56_v20 = vld [vmem:[#allocation5 + $0x20] sm:$0xff] }
  0x21   :  { %70 = vst [vmem:[#allocation7] sm:$0xff] %v64_v9  ;;  %v66_v17 = vadd.f32 %v60_v12, %v48_v11  ;;  %v45_v21 = vld [vmem:[#allocation2 + $0x28] sm:$0xff]  ;;  %v50_v22 = vmul.f32 0.6, %v44_v15  ;;  %v62_v23 = vmul.f32 0.4, %v56_v20 }
  0x22   :  { %v51_v24 = vmul.f32 0.6, %v45_v21  ;;  %71 = vst [vmem:[#allocation7 + $0x8] sm:$0xff] %v65_v16  ;;  %v67_v25 = vadd.f32 %v61_v19, %v49_v18  ;;  %v57_v26 = vld [vmem:[#allocation5 + $0x28] sm:$0xff]  ;;  %s81_s1 = sshll.u32 %s169_s0, 4  ;;  %s82_s1 = int_to_ptr.vmem [resolvable:$true] %s81_s1 }
  0x23   :  { %72 = vst [vmem:[#allocation7 + $0x10] sm:$0xff] %v66_v17  ;;  %v68_v27 = vadd.f32 %v62_v23, %v50_v22  ;;  %v63_v28 = vmul.f32 0.4, %v57_v26  ;;  %s139_s21 = scalar_lea.vmem %s82_s1, 768  ;;  %p144_p11 = scmp.lt.s32.totalorder %s82_s1, %s82_s1 }
  0x24   :  { %73 = vst [vmem:[#allocation7 + $0x18] sm:$0xff] %v67_v25  ;;  %p140_p10 = scmp.ne.s32.totalorder %s82_s1, %s139_s21  ;;  %p145_p12 = scmp.lt.s32.totalorder %s139_s21, %s139_s21 }
  0x25   :  { %74 = vst [vmem:[#allocation7 + $0x20] sm:$0xff] %v68_v27  ;;  %v69_v29 = vadd.f32 %v63_v28, %v51_v24 }
  0x26   :  { %p146_p13 = por %p145_p12, %p144_p11 }
  0x27   :  { %75 = vst [vmem:[#allocation7 + $0x28] sm:$0xff] %v69_v29 }
  0x28   :  { %p147_p0 = pnand %p146_p13, %p140_p10 }
  0x2a   :  { %150 = shalt.err (!%p147_p0)
}
  0x2b   :  { %87 = dma.vmem_to_hbm [thread:$0]  %s82_s1, 768, %s205_s2, [#allocation4], %s166_s12, %s166_s12, %s167_s13  }
  0x2c   :  { %163 = dma.done.wait [#allocation4], 768  }
  0x2d   :  { %164 = vsyncadd [#allocation4], 4294966528 }
  0x2e   :  { %91 = vsyncpa [#allocation3], 1 }
  0x2f   :  { %92 = vsyncpa [#allocation6], 1 }
  0x30   :  { %93 = vsyncpa [#allocation4], 1 }

</bundles_post_ra>
